<compile_context>
chip_gen: v6e
topology: v6e:2x2x1
jax: 0.10.0
libtpu: 0.0.40
codegen_flags: <defaults>
</compile_context>

<pallas_src>
import random

import jax
import jax.numpy as jnp
import numpy as np
from jax.experimental import pallas as pl
from jax.experimental.pallas import tpu as pltpu


def _make_kernel(freq_masks, time_masks, mask_value, tile_t):
    """Kernel closed over static mask counts, mask value and time-tile size."""
    stride = 2 * freq_masks + 2 * time_masks  # int32 entries per batch element

    def kernel(tbl_ref, x_ref, o_ref):
        b = pl.program_id(0)        # batch element
        tt = pl.program_id(1)       # time tile index
        F, TT = x_ref.shape         # (F, TILE_T) thanks to pl.Squeezed()
        base = b * stride

        x = x_ref[...]
        mv = jnp.asarray(mask_value, x.dtype)
        out = x

        # Time masks -> thin (1, TT) col-mask (global column indices); one
        # broadcasted select.  Columns past T (boundary tile) compute garbage
        # but their stores are masked by Pallas, so it is irrelevant.
        if time_masks:
            col = jax.lax.broadcasted_iota(jnp.int32, (1, TT), 1) + tt * tile_t
            col_mask = jnp.zeros((1, TT), dtype=jnp.bool_)
            toff = 2 * freq_masks
            for i in range(time_masks):
                s = tbl_ref[base + toff + 2 * i]
                w = tbl_ref[base + toff + 2 * i + 1]
                col_mask = col_mask | ((col >= s) & (col < s + w))
            out = jnp.where(col_mask, mv, out)

        # Frequency masks -> thin (F, 1) row-mask; second broadcasted select.
        if freq_masks:
            row = jax.lax.broadcasted_iota(jnp.int32, (F, 1), 0)
            row_mask = jnp.zeros((F, 1), dtype=jnp.bool_)
            for i in range(freq_masks):
                s = tbl_ref[base + 2 * i]
                w = tbl_ref[base + 2 * i + 1]
                row_mask = row_mask | ((row >= s) & (row < s + w))
            out = jnp.where(row_mask, mv, out)

        o_ref[...] = out

    return kernel


class SpecAugmentPallas:
    """JAX/Pallas port of the PyTorch SpecAugment module (forward pass)."""

    def __init__(self, freq_masks=0, time_masks=0, freq_width=10,
                 time_width=10, rng=None, mask_value=0.0, max_time_tile=8192):
        self._rng = random.Random() if rng is None else rng
        self.freq_masks = freq_masks
        self.time_masks = time_masks
        self.freq_width = freq_width
        self.time_width = time_width
        self.mask_value = mask_value
        # Upper bound on the time-tile width (lanes); multiple of 128, >= 128.
        self._max_time_tile = max(128, (int(max_time_tile) // 128) * 128)
        if isinstance(time_width, int):
            self.adaptive_temporal_width = False
        else:
            if time_width > 1.0 or time_width < 0.0:
                raise ValueError(
                    "If `time_width` is a float value, must be in range [0, 1]")
            self.adaptive_temporal_width = True

    def _draw_mask_table(self, sh, length):
        """Host-side RNG (same call order as torch module) -> flat int32 table.

        Layout per batch element b:
          [fs_0, fw_0, ..., fs_{nf-1}, fw_{nf-1}, ts_0, tw_0, ..., tw_{nt-1}]
        """
        B = sh[0]
        table = []
        for idx in range(B):
            for _ in range(self.freq_masks):
                # max(0, ...) guards F < freq_width (torch would raise here).
                x_left = self._rng.randint(0, max(0, sh[1] - self.freq_width))
                w = self._rng.randint(0, self.freq_width)
                table.extend((x_left, w))
            for _ in range(self.time_masks):
                if self.adaptive_temporal_width:
                    time_width = max(1, int(length[idx] * self.time_width))
                else:
                    time_width = self.time_width
                y_left = self._rng.randint(0, max(1, int(length[idx]) - time_width))
                w = self._rng.randint(0, time_width)
                table.extend((y_left, w))
        if not table:
            table = [0]  # avoid zero-length prefetch array (unreachable: no-op
                         # configs short-circuit before the kernel)
        return jnp.asarray(table, dtype=jnp.int32)

    def _pick_tile_t(self, B, F, T, itemsize):
        """Pick the time-tile width (lanes).

        Prefers the whole time axis per block when it fits the per-block VMEM
        budget; otherwise the largest multiple-of-128 tile under the budget
        (interior tiles lane-dense, one partial boundary tile).  ~3 MiB/block
        keeps 2 arrays x 2 pipeline buffers under the smallest scoped-VMEM
        default (16 MiB on v5e) and well inside v7x's 64 MiB physical VMEM.
        """
        budget_bytes = 3 * 1024 * 1024
        cap = (budget_bytes // max(1, F * itemsize)) // 128 * 128
        cap = max(128, min(self._max_time_tile, cap))
        if T <= cap:
            tile_t = T          # whole time axis in one (full-dim) block
        else:
            tile_t = cap

        # v7x megacore: keep >= 4 grid steps when possible so both TensorCores
        # get work, but never shrink below the ~512-lane HBM-roofline knee.
        def _cdiv(a, b):
            return (a + b - 1) // b

        while B * _cdiv(T, tile_t) < 4 and tile_t > 512:
            new_t = max(512, ((tile_t // 2 + 127) // 128) * 128)
            if new_t >= tile_t:
                break
            tile_t = new_t
        return tile_t

    def __call__(self, input_spec, length):
        B, F, T = input_spec.shape

        # No-op configuration: skip the kernel (and its full HBM pass) entirely.
        if self.freq_masks == 0 and self.time_masks == 0:
            return input_spec

        table = self._draw_mask_table((B, F, T), list(length))
        itemsize = jnp.dtype(input_spec.dtype).itemsize
        tile_t = self._pick_tile_t(B, F, T, itemsize)
        grid = (B, pl.cdiv(T, tile_t))

        kernel = _make_kernel(self.freq_masks, self.time_masks,
                              self.mask_value, tile_t)

        grid_spec = pltpu.PrefetchScalarGridSpec(
            num_scalar_prefetch=1,
            grid=grid,
            in_specs=[
                pl.BlockSpec((pl.Squeezed(), F, tile_t),
                             lambda b, t, tbl: (b, 0, t)),
            ],
            out_specs=pl.BlockSpec((pl.Squeezed(), F, tile_t),
                                   lambda b, t, tbl: (b, 0, t)),
        )

        out = pl.pallas_call(
            kernel,
            out_shape=jax.ShapeDtypeStruct((B, F, T), input_spec.dtype),
            grid_spec=grid_spec,
            # x is input index 1 (after the scalar-prefetch table): donate it
            # to the output -> no second B*F*T allocation when the caller jits
            # with donation (matches the in-place torch semantics).
            input_output_aliases={1: 0},
            compiler_params=pltpu.CompilerParams(
                # Both axes independent -> megacore can shard either one (v7x).
                dimension_semantics=("parallel", "parallel")),
        )(table, input_spec)
        return out


def _reference(x_np, table, freq_masks, time_masks, mask_value):
    """Numpy slice-assignment reference using the same drawn mask table."""
    xn = np.array(x_np, copy=True)
    B = xn.shape[0]
    stride = 2 * freq_masks + 2 * time_masks
    tbl = np.array(table)
    for b in range(B):
        base = b * stride
        for i in range(freq_masks):
            s = int(tbl[base + 2 * i]); w = int(tbl[base + 2 * i + 1])
            xn[b, s:s + w, :] = mask_value
        off = base + 2 * freq_masks
        for i in range(time_masks):
            s = int(tbl[off + 2 * i]); w = int(tbl[off + 2 * i + 1])
            xn[b, :, s:s + w] = mask_value
    return xn


def _run_case(B, F, T, length, freq_masks, time_masks, freq_width, time_width,
              seed, max_time_tile=8192):
    key = jax.random.PRNGKey(0)
    x = jax.random.normal(key, (B, F, T), dtype=jnp.float32)
    x_np = np.asarray(x)  # host copy for the reference (input is donated)

    mod = SpecAugmentPallas(freq_masks=freq_masks, time_masks=time_masks,
                            freq_width=freq_width, time_width=time_width,
                            rng=random.Random(seed), mask_value=0.0,
                            max_time_tile=max_time_tile)
    out = mod(x, length)
    jax.block_until_ready(out)

    # Reference with an identical RNG stream.
    mod_ref = SpecAugmentPallas(freq_masks=freq_masks, time_masks=time_masks,
                                freq_width=freq_width, time_width=time_width,
                                rng=random.Random(seed), mask_value=0.0,
                                max_time_tile=max_time_tile)
    table = mod_ref._draw_mask_table((B, F, T), list(length))
    ref = _reference(x_np, table, freq_masks, time_masks, 0.0)
    assert out.shape == (B, F, T)
    assert np.allclose(np.array(out), ref), "mismatch vs reference"


if __name__ == "__main__":
    # Case 1: small ragged T fitting a single full-T block (no pad, no slice).
    _run_case(B=2, F=16, T=64, length=[64, 48],
              freq_masks=2, time_masks=2, freq_width=4, time_width=4,
              seed=0, max_time_tile=2048)

    # Case 2: multiple time tiles, evenly divided (per-tile column offset).
    _run_case(B=2, F=16, T=256, length=[256, 200],
              freq_masks=2, time_masks=3, freq_width=4, time_width=16,
              seed=1, max_time_tile=128)

    # Case 3: ragged T with multiple tiles -> partial boundary tile path
    # (interior tiles lane-dense, last tile masked stores).
    _run_case(B=2, F=16, T=200, length=[200, 150],
              freq_masks=1, time_masks=2, freq_width=4, time_width=8,
              seed=2, max_time_tile=128)

    # Case 4: B=1 megacore split (tile shrunk to keep >=4 grid steps) with
    # adaptive (float) time_width.
    _run_case(B=1, F=16, T=2048, length=[1500],
              freq_masks=1, time_masks=2, freq_width=4, time_width=0.05,
              seed=3)

    # Case 5: no-op configuration short-circuits the kernel entirely.
    _run_case(B=2, F=16, T=64, length=[64, 64],
              freq_masks=0, time_masks=0, freq_width=4, time_width=4,
              seed=4)

    print("KERNEL_OK")
</pallas_src>

<mosaic_0001>
module attributes {stable_mosaic.version = 11 : i64} {
  func.func @kernel(%arg0: i32, %arg1: i32, %arg2: memref<16xi32, #tpu.memory_space<smem>>, %arg3: memref<1x16x64xf32, #tpu.memory_space<vmem>>, %arg4: memref<1x16x64xf32, #tpu.memory_space<vmem>>) attributes {dimension_semantics = [#tpu.dimension_semantics<parallel>, #tpu.dimension_semantics<parallel>], iteration_bounds = array<i64: 2, 1>, scalar_prefetch = 1 : i64, scratch_operands = 0 : i64, tpu.core_type = #tpu.core_type<tc>, window_params = [{transform_indices = @transform_0, window_bounds = array<i64: 1, 16, 64>}, {transform_indices = @transform_1, window_bounds = array<i64: 1, 16, 64>}]} {
    %c8_i32 = arith.constant 8 : i32
    %0 = arith.muli %arg0, %c8_i32 : i32
    %c0 = arith.constant 0 : index
    %c0_0 = arith.constant 0 : index
    %c0_1 = arith.constant 0 : index
    %1 = vector.load %arg3[%c0, %c0_0, %c0_1] : memref<1x16x64xf32, #tpu.memory_space<vmem>>, vector<1x16x64xf32>
    %2 = vector.shape_cast %1 : vector<1x16x64xf32> to vector<16x64xf32>
    %3 = tpu.iota {dimensions = array<i32: 1>} : vector<1x64xi32>
    %c64_i32 = arith.constant 64 : i32
    %4 = arith.muli %arg1, %c64_i32 : i32
    %5 = vector.broadcast %4 : i32 to vector<1x64xi32>
    %6 = arith.addi %3, %5 : vector<1x64xi32>
    %false = arith.constant false
    %7 = vector.broadcast %false : i1 to vector<1x64xi1>
    %c4_i32 = arith.constant 4 : i32
    %8 = arith.addi %0, %c4_i32 : i32
    %c0_i32 = arith.constant 0 : i32
    %9 = arith.addi %8, %c0_i32 : i32
    %10 = arith.index_cast %9 : i32 to index
    %11 = memref.load %arg2[%10] : memref<16xi32, #tpu.memory_space<smem>>
    %c4_i32_2 = arith.constant 4 : i32
    %12 = arith.addi %0, %c4_i32_2 : i32
    %c0_i32_3 = arith.constant 0 : i32
    %13 = arith.addi %12, %c0_i32_3 : i32
    %c1_i32 = arith.constant 1 : i32
    %14 = arith.addi %13, %c1_i32 : i32
    %15 = arith.index_cast %14 : i32 to index
    %16 = memref.load %arg2[%15] : memref<16xi32, #tpu.memory_space<smem>>
    %17 = vector.broadcast %11 : i32 to vector<1x64xi32>
    %18 = arith.cmpi sge, %6, %17 : vector<1x64xi32>
    %19 = arith.addi %11, %16 : i32
    %20 = vector.broadcast %19 : i32 to vector<1x64xi32>
    %21 = arith.cmpi slt, %6, %20 : vector<1x64xi32>
    %22 = arith.andi %18, %21 : vector<1x64xi1>
    %23 = arith.ori %7, %22 : vector<1x64xi1>
    %c4_i32_4 = arith.constant 4 : i32
    %24 = arith.addi %0, %c4_i32_4 : i32
    %c2_i32 = arith.constant 2 : i32
    %25 = arith.addi %24, %c2_i32 : i32
    %26 = arith.index_cast %25 : i32 to index
    %27 = memref.load %arg2[%26] : memref<16xi32, #tpu.memory_space<smem>>
    %c4_i32_5 = arith.constant 4 : i32
    %28 = arith.addi %0, %c4_i32_5 : i32
    %c2_i32_6 = arith.constant 2 : i32
    %29 = arith.addi %28, %c2_i32_6 : i32
    %c1_i32_7 = arith.constant 1 : i32
    %30 = arith.addi %29, %c1_i32_7 : i32
    %31 = arith.index_cast %30 : i32 to index
    %32 = memref.load %arg2[%31] : memref<16xi32, #tpu.memory_space<smem>>
    %33 = vector.broadcast %27 : i32 to vector<1x64xi32>
    %34 = arith.cmpi sge, %6, %33 : vector<1x64xi32>
    %35 = arith.addi %27, %32 : i32
    %36 = vector.broadcast %35 : i32 to vector<1x64xi32>
    %37 = arith.cmpi slt, %6, %36 : vector<1x64xi32>
    %38 = arith.andi %34, %37 : vector<1x64xi1>
    %39 = arith.ori %23, %38 : vector<1x64xi1>
    %cst = arith.constant 0.000000e+00 : f32
    %40 = vector.shape_cast %39 : vector<1x64xi1> to vector<1x64xi1>
    %41 = vector.broadcast %40 : vector<1x64xi1> to vector<16x64xi1>
    %42 = vector.broadcast %cst : f32 to vector<16x64xf32>
    %43 = arith.select %41, %42, %2 : vector<16x64xi1>, vector<16x64xf32>
    %44 = tpu.iota {dimensions = array<i32: 0>} : vector<16x1xi32>
    %false_8 = arith.constant false
    %45 = vector.broadcast %false_8 : i1 to vector<16x1xi1>
    %c0_i32_9 = arith.constant 0 : i32
    %46 = arith.addi %0, %c0_i32_9 : i32
    %47 = arith.index_cast %46 : i32 to index
    %48 = memref.load %arg2[%47] : memref<16xi32, #tpu.memory_space<smem>>
    %c0_i32_10 = arith.constant 0 : i32
    %49 = arith.addi %0, %c0_i32_10 : i32
    %c1_i32_11 = arith.constant 1 : i32
    %50 = arith.addi %49, %c1_i32_11 : i32
    %51 = arith.index_cast %50 : i32 to index
    %52 = memref.load %arg2[%51] : memref<16xi32, #tpu.memory_space<smem>>
    %53 = vector.broadcast %48 : i32 to vector<16x1xi32>
    %54 = arith.cmpi sge, %44, %53 : vector<16x1xi32>
    %55 = arith.addi %48, %52 : i32
    %56 = vector.broadcast %55 : i32 to vector<16x1xi32>
    %57 = arith.cmpi slt, %44, %56 : vector<16x1xi32>
    %58 = arith.andi %54, %57 : vector<16x1xi1>
    %59 = arith.ori %45, %58 : vector<16x1xi1>
    %c2_i32_12 = arith.constant 2 : i32
    %60 = arith.addi %0, %c2_i32_12 : i32
    %61 = arith.index_cast %60 : i32 to index
    %62 = memref.load %arg2[%61] : memref<16xi32, #tpu.memory_space<smem>>
    %c2_i32_13 = arith.constant 2 : i32
    %63 = arith.addi %0, %c2_i32_13 : i32
    %c1_i32_14 = arith.constant 1 : i32
    %64 = arith.addi %63, %c1_i32_14 : i32
    %65 = arith.index_cast %64 : i32 to index
    %66 = memref.load %arg2[%65] : memref<16xi32, #tpu.memory_space<smem>>
    %67 = vector.broadcast %62 : i32 to vector<16x1xi32>
    %68 = arith.cmpi sge, %44, %67 : vector<16x1xi32>
    %69 = arith.addi %62, %66 : i32
    %70 = vector.broadcast %69 : i32 to vector<16x1xi32>
    %71 = arith.cmpi slt, %44, %70 : vector<16x1xi32>
    %72 = arith.andi %68, %71 : vector<16x1xi1>
    %73 = arith.ori %59, %72 : vector<16x1xi1>
    %cst_15 = arith.constant 0.000000e+00 : f32
    %74 = vector.shape_cast %73 : vector<16x1xi1> to vector<16x1xi1>
    %75 = vector.broadcast %74 : vector<16x1xi1> to vector<16x64xi1>
    %76 = vector.broadcast %cst_15 : f32 to vector<16x64xf32>
    %77 = arith.select %75, %76, %43 : vector<16x64xi1>, vector<16x64xf32>
    %c0_16 = arith.constant 0 : index
    %c0_17 = arith.constant 0 : index
    %c0_18 = arith.constant 0 : index
    %78 = vector.load %arg4[%c0_16, %c0_17, %c0_18] : memref<1x16x64xf32, #tpu.memory_space<vmem>>, vector<1x16x64xf32>
    %79 = vector.shape_cast %78 : vector<1x16x64xf32> to vector<16x64xf32>
    %80 = vector.shape_cast %77 : vector<16x64xf32> to vector<1x16x64xf32>
    tpu.vector_store %arg4[%c0_16, %c0_17, %c0_18], %80 {strides = array<i32>} : memref<1x16x64xf32, #tpu.memory_space<vmem>>, vector<1x16x64xf32>,
    return
  }
  func.func @transform_0(%arg0: i32, %arg1: i32, %arg2: memref<16xi32, #tpu.memory_space<smem>>) -> (i32, i32, i32) {
    %c0_i32 = arith.constant 0 : i32
    %c0_i32_0 = arith.constant 0 : i32
    return %arg0, %c0_i32, %arg1 : i32, i32, i32
  }
  func.func @transform_1(%arg0: i32, %arg1: i32, %arg2: memref<16xi32, #tpu.memory_space<smem>>) -> (i32, i32, i32) {
    %c0_i32 = arith.constant 0 : i32
    %c0_i32_0 = arith.constant 0 : i32
    return %arg0, %c0_i32, %arg1 : i32, i32, i32
  }
}

</mosaic_0001>

<bundles_post_ra>
// kernel: tpu_custom_call.1
= control target key start
LH: loop header
LB: loop body
LE: loop exit
PB: predicated region body
PF: predicated region fallthrough
CT: control target
= control target key end

     0   :  { %s752_s0 = inlined_call_operand.vmem [shape: s32[16], index: 0, kind: input, shape index: {}]   ;;  %s753_s1 = inlined_call_operand.hbm [shape: f32[2,16,64], index: 1, kind: input, shape index: {}, may-alias: {1,2}]   ;;  %s754_s2 = inlined_call_operand.hbm [shape: f32[2,16,64], index: 2, kind: output, shape index: {}, may-alias: {1,2}]  }
   0x1   :  { %s7_s11 = sshll.u32 %s752_s0, 4  ;;  %s8_s11 = int_to_ptr.vmem [resolvable:$true] %s7_s11 }
   0x2   :  { %s416_s12 = scalar_lea.vmem %s8_s11, 16  ;;  %p421_p1 = scmp.lt.s32.totalorder %s8_s11, %s8_s11 }
   0x3   :  { %p417_p0 = scmp.ne.s32.totalorder %s8_s11, %s416_s12  ;;  %p422_p2 = scmp.lt.s32.totalorder %s416_s12, %s416_s12 }
   0x5   :  { %p423_p3 = por %p422_p2, %p421_p1 }
   0x7   :  { %p424_p4 = pnand %p423_p3, %p417_p0 }
   0x9   :  { %427 = shalt.err (!%p424_p4)  }
   0xa   :  { %s540_s13 = smov [#allocation3]  }
   0xb   :  { %10 = dma.vmem_to_smem %s8_s11, 16, %s540_s13, [#allocation2] }
   0xc   :  { %506 = dma.done.wait [#allocation2], 16 }
   0xd   :  { %507 = vsyncadd [#allocation2], 4294967280 }
   0xe   :  { %12 = sfence }
   0xf   :  { %13 = vsyncpa [#allocation5], 0 }
  0x10   :  { %15 = vsyncpa [#allocation5 + $0x1], 0 }
  0x11   :  { %16 = vsyncpa [#allocation6], 0 }
  0x12   :  { %18 = vsyncpa [#allocation6 + $0x1], 0  ;;  %s565_s14 = smov 0   ;;  %s567_s0 = smov 0  }
  0x13   :  { %s569_s15 = smov 0   ;;  %s571_s16 = smov 0  }
  0x14   :  { %s573_s17 = smov 0   ;;  %s575_s18 = smov 0  }
  0x15 LB: > { %s331_s19 = sadd.s32 4294967295, %s538_s18   ;;  %s332_s20 = sadd.s32 4294967294, %s538_s18   ;;  %s538_s18 = sphi %s575_s18, %s24_s18   ;;  %s534_s17 = sphi %s573_s17, %s773_s17   ;;  %s530_s16 = sphi %s571_s16, %s772_s16   ;;  %s526_s15 = sphi %s569_s15, %s771_s15   ;;  %s522_s0 = sphi %s567_s0, %s770_s0   ;;  %s518_s14 = sphi %s565_s14, %s769_s14  }
  0x16   : > { %s36_s21 = sadd.s32 1, %s534_s17  ;;  %s45_s22 = sadd.s32 1, %s526_s15 }
  0x17   : > { %p38_p5 = scmp.ge.s32.totalorder %s36_s21, 2  ;;  %p52_p6 = scmp.ne.s32.totalorder %s526_s15, %s522_s0 }
  0x18   : > { %p53_p7 = scmp.eq.s32.totalorder %s538_s18, 0  ;;  %p58_p8 = scmp.ne.s32.totalorder %s522_s0, %s518_s14 }
  0x19   : > { %s775_s21 = smov (%p38_p5, %s36_s21), 0  ;;  %p59_p10 = scmp.eq.s32.totalorder %s331_s19, 0 }
  0x1a   : > { %p606_p9 = por %p53_p7, %p52_p6  ;;  %s40_s24 = ssub.s32 %s534_s17, %s775_s21 }
  0x1b   : > { %p84_p11 = scmp.eq.s32.totalorder %s331_s19, 1  ;;  %p43_p12 = scmp.eq.s32.totalorder %s40_s24, 0 }
  0x1c   : > { %p612_p13 = por %p59_p10, %p58_p8  ;;  %p90_p1 = scmp.eq.s32.totalorder %s332_s20, 1 }
  0x1d   : > { %p616_p0 = por %p84_p11, %p52_p6  ;;  %p361_p4 = scmp.lt.s32.totalorder %s538_s18, 2 }
  0x1e   : > { %s621_s27 = scalar_select %p43_p12, %s526_s15, %s45_s22  }
  0x1f   : > { %p623_p2 = por %p90_p1, %p58_p8  ;;  %s110_s29 = sand.u32 1, %s526_s15  }
  0x20   : > { %s335_s30 = sshll.u32 %s110_s29, 4  ;;  %s347_s3 = sshll.u32 %s534_s17, 8 }
  0x21   : > { %s121_s6 = scalar_lea.hbm %s753_s1, %s347_s3  ;;  %s114_s7 = scalar_lea.vmem [#allocation4], %s335_s30 }
  0x22   : > { %s122_s8 = sshll.u32 %s114_s7, 4  ;;  %p636_p5 = pnand %p361_p4, %p606_p9  ;;  %s123_s8 = int_to_ptr.vmem [resolvable:$true] %s122_s8 }
  0x23   : > { %p338_p6 = scmp.ge.s32.totalorder %s538_s18, 1  ;;  %s111_s10 = scalar_lea.sflag [#allocation5], %s110_s29 }
  0x24   : > { %p430_p7 = pneg %p636_p5  ;;  %s441_s11 = scalar_lea.vmem %s123_s8, 256 }
  0x25   : > { %p442_p8 = scmp.ne.s32.totalorder %s123_s8, %s441_s11  ;;  %s541_s12 = smov [#allocation4]  }
  0x26   : > { %s446_s13 = sshll.u32 %s541_s12, 4  ;;  %s447_s13 = int_to_ptr.vmem [resolvable:$false] %s446_s13 }
  0x27   : > { %p444_p10 = pnand %p442_p8, %p430_p7  ;;  %s448_s19 = scalar_lea.vmem %s447_s13, 512 }
  0x28   : > { %p449_p12 = scmp.lt.s32.totalorder %s123_s8, %s447_s13  ;;  %p450_p1 = scmp.lt.s32.totalorder %s448_s19, %s441_s11 }
  0x29   : > { %p445_p11 = pneg %p444_p10 }
  0x2a   : > { %p451_p3 = por %p450_p1, %p449_p12 }
  0x2c   : > { %p452_p9 = pnand %p451_p3, %p445_p11 }
  0x2e   : > { %455 = shalt.err (!%p452_p9)
}
  0x2f   : > { %s542_s20 = smov 128   ;;  %s543_s22 = smov 8  }
  0x30   : > { %356 = dma.hbm_to_vmem [thread:$0]  (!%p636_p5), %s121_s6, 256, %s123_s8, %s111_s10, %s542_s20, %s542_s20, %s543_s22  }
  0x31   : > { %p130_p4 = scmp.lt.s32.totalorder %s538_s18, 3 }
  0x33   : > { %p131_p7 = pnand %p338_p6, %p130_p4 }
  0x34   : > { %s649_s23 = sand.u32 (!%p131_p7), 1, %s522_s0  }
  0x35   : > { %134 = sbr.rel (%p131_p7) target bundleno = 97 (0x61), region = 24  ;;  %s755_s24 = sshll.u32 (!%p131_p7), %s649_s23, 4 }
  0x36   : > { %s137_s29 = scalar_lea.sflag (!%p131_p7), [#allocation5], %s649_s23  ;;  %s655_s30 = scalar_lea.vmem (!%p131_p7), [#allocation4], %s755_s24 }
  0x3a   : > { %509 = dma.done.wait (%p612_p13), %s137_s29, 256  }
  0x3b   : > { %511 = vsyncadd (%p612_p13), %s137_s29, 4294967040  ;;  %s341_s3 = sshll.u32 %s530_s16, 3  ;;  %v162_v0 = vlaneseq  ;;  %v160_v10 = vld [vmem:[%s655_s30] sm:$0xff]  ;;  %v161_v16 = vld [vmem:[%s655_s30 + $0x8] sm:$0xff] }
  0x3c   : > { %s167_s4 = sadd.s32 4, %s341_s3  ;;  %s169_s5 = sadd.s32 5, %s341_s3 }
  0x3d   : > { %s168_s6 = sld [smem:[#allocation3 + %s167_s4]]  ;;  %s177_s7 = sadd.s32 6, %s341_s3  ;;  %v163_v1 = vand.u32 127, %v162_v0  ;;  %v193_v2 = vshrl.u32 %v162_v0, 7 }
  0x3e   : > { %s170_s8 = sld [smem:[#allocation3 + %s169_s5]]  ;;  %s179_s9 = sadd.s32 7, %s341_s3 }
  0x3f   : > { %s178_s10 = sld [smem:[#allocation3 + %s177_s7]]  ;;  %s196_s11 = sadd.s32 1, %s341_s3  ;;  %v194_v6 = vadd.s32 8, %v193_v2 }
  0x40   : > { %s180_s12 = sld [smem:[#allocation3 + %s179_s9]]  ;;  %s207_s13 = sadd.s32 2, %s341_s3 }
  0x41   : > { %s195_s19 = sld [smem:[#allocation3 + %s341_s3]]  ;;  %s209_s20 = sadd.s32 3, %s341_s3 }
  0x42   : > { %s197_s22 = sld [smem:[#allocation3 + %s196_s11]] }
  0x43   : > { %v171_v3 = vstv %s168_s6  ;;  %s662_s25 = sld [smem:[#allocation3 + %s207_s13]] }
  0x44   : > { %vm172_vm0 = vcmp.ge.s32.totalorder %v163_v1, %v171_v3  ;;  %s173_s29 = sadd.s32 %s170_s8, %s168_s6  ;;  %s210_s24 = sld [smem:[#allocation3 + %s209_s20]] }
  0x45   : > { %v174_v4 = vstv %s173_s29  ;;  %v181_v5 = vstv %s178_s10  ;;  %s767_s6 = sshll.u32 %s649_s23, 4 }
  0x46   : > { %vm175_vm1 = vcmp.lt.s32.totalorder %v163_v1, %v174_v4  ;;  %vm182_vm2 = vcmp.ge.s32.totalorder %v163_v1, %v181_v5  ;;  %s183_s4 = sadd.s32 %s180_s12, %s178_s10  ;;  %s158_s7 = scalar_lea.vmem [#allocation7], %s767_s6 }
  0x47   : > { %vm664_vm3 = vmand %vm172_vm0, %vm175_vm1  ;;  %v184_v8 = vstv %s183_s4  ;;  %v198_v9 = vstv %s195_s19  ;;  %s246_s8 = sshll.u32 %s158_s7, 4  ;;  %s232_s10 = scalar_lea.sflag [#allocation6], %s649_s23  ;;  %s694_s8 = int_to_ptr.vmem [resolvable:$true] %s246_s8 }
  0x48   : > { %vm185_vm4 = vcmp.lt.s32.totalorder %v163_v1, %v184_v8  ;;  %vm199_vm5 = vcmp.ge.s32.totalorder %v193_v2, %v198_v9  ;;  %s201_s3 = sadd.s32 %s197_s22, %s195_s19  ;;  %vm200_vm7 = vcmp.ge.s32.totalorder %v194_v6, %v198_v9  ;;  %s456_s11 = scalar_lea.vmem %s694_s8, 256 }
  0x49   : > { %vm669_vm6 = vmand %vm182_vm2, %vm185_vm4  ;;  %v202_v12 = vstv %s201_s3  ;;  %v211_v13 = vstv %s662_s25  ;;  %vm228_vm2 = vcmask 523264   ;;  %p457_p13 = scmp.ne.s32.totalorder %s694_s8, %s456_s11  ;;  %s544_s12 = smov [#allocation7]  }
  0x4a   : > { %vm187_vm8 = vmor %vm664_vm3, %vm669_vm6  ;;  %vm203_vm9 = vcmp.lt.s32.totalorder %v193_v2, %v202_v12  ;;  %vm212_vm10 = vcmp.ge.s32.totalorder %v193_v2, %v211_v13  ;;  %s214_s5 = sadd.s32 %s210_s24, %s662_s25  ;;  %vm204_vm11 = vcmp.lt.s32.totalorder %v194_v6, %v202_v12  ;;  %vm213_vm15 = vcmp.ge.s32.totalorder %v194_v6, %v211_v13  ;;  %s348_s24 = sshll.u32 %s530_s16, 8 }
  0x4b   : > { %vm679_vm12 = vmand %vm199_vm5, %vm203_vm9  ;;  %v215_v15 = vstv %s214_s5  ;;  %v190_v17 = vsel %vm187_vm8, 0.0, %v160_v10  ;;  %v191_v18 = vsel %vm187_vm8, 0.0, %v161_v16  ;;  %s704_s9 = scalar_lea.hbm %s754_s2, %s348_s24  ;;  %p458_p3 = pnand %p457_p13, %p616_p0 }
  0x4c   : > { %vm216_vm13 = vcmp.lt.s32.totalorder %v193_v2, %v215_v15  ;;  %vm206_vm14 = vmand %vm200_vm7, %vm204_vm11  ;;  %vm217_vm0 = vcmp.lt.s32.totalorder %v194_v6, %v215_v15  ;;  %s460_s13 = sshll.u32 %s544_s12, 4  ;;  %s461_s13 = int_to_ptr.vmem [resolvable:$false] %s460_s13 }
  0x4d   : > { %vm218_vm1 = vmand %vm212_vm10, %vm216_vm13  ;;  %p459_p5 = pneg %p458_p3  ;;  %s462_s19 = scalar_lea.vmem %s461_s13, 512 }
  0x4e   : > { %vm220_vm4 = vmor %vm679_vm12, %vm218_vm1  ;;  %p463_p6 = scmp.lt.s32.totalorder %s694_s8, %s461_s13  ;;  %p464_p8 = scmp.lt.s32.totalorder %s462_s19, %s456_s11 }
  0x4f   : > { %v226_v19 = vsel %vm220_vm4, 0.0, %v190_v17  ;;  %vm219_vm5 = vmand %vm213_vm15, %vm217_vm0 }
  0x50   : > { %229 = vst.msk [vmem:[%s158_s7] sm:$0xff] %vm228_vm2, %v226_v19  ;;  %vm221_vm7 = vmor %vm206_vm14, %vm219_vm5  ;;  %p465_p10 = por %p464_p8, %p463_p6 }
  0x51   : > { %v227_v20 = vsel %vm221_vm7, 0.0, %v191_v18 }
  0x52   : > { %230 = vst.msk [vmem:[%s158_s7 + $0x8] sm:$0xff] %vm228_vm2, %v227_v20  ;;  %p466_p11 = pnand %p465_p10, %p459_p5 }
  0x54   : > { %469 = shalt.err (!%p466_p11)
}
  0x55   : > { %s470_s20 = scalar_lea.hbm %s704_s9, 256  ;;  %s474_s29 = scalar_lea.hbm %s754_s2, 512 }
  0x56   : > { %p471_p12 = scmp.ne.s32.totalorder %s704_s9, %s470_s20  ;;  %p475_p4 = scmp.lt.s32.totalorder %s704_s9, %s754_s2 }
  0x57   : > { %p476_p7 = scmp.lt.s32.totalorder %s474_s29, %s470_s20 }
  0x58   : > { %p472_p1 = pnand %p471_p12, %p616_p0 }
  0x59   : > { %p477_p13 = por %p476_p7, %p475_p4 }
  0x5a   : > { %p473_p9 = pneg %p472_p1 }
  0x5c   : > { %p478_p3 = pnand %p477_p13, %p473_p9 }
  0x5e   : > { %481 = shalt.err (!%p478_p3)
}
  0x5f   : > { %s545_s5 = smov 128   ;;  %s546_s6 = smov 8  }
  0x60   : > { %351 = dma.vmem_to_hbm [thread:$0]  (%p616_p0), %s694_s8, 256, %s704_s9, %s232_s10, %s545_s5, %s545_s5, %s546_s6  }
  0x61 PF: > { %s261_s7 = sand.u32 1, %s518_s14   ;;  %p768_p5 = scmp.ge.s32.totalorder %s538_s18, 2 }
  0x62   : > { %s262_s24 = scalar_lea.sflag [#allocation6], %s261_s7 }
  0x63   : > { %p358_p6 = pnand %p768_p5, %p623_p2 }
  0x65   : > { %p359_p8 = pneg %p358_p6 }
  0x67   : > { %513 = dma.done.wait (%p359_p8), %s262_s24, 256  }
  0x68   : > { %515 = vsyncadd (%p359_p8), %s262_s24, 4294967040  ;;  %s24_s18 = sadd.s32 1, %s538_s18   ;;  %s769_s14 = smov %s522_s0 }
  0x69   : > { %p21_p10 = scmp.ge.s32.totalorder %s24_s18, 4   ;;  %s770_s0 = smov %s526_s15 }
  0x6a   : > { %s771_s15 = smov %s621_s27  ;;  %s772_s16 = smov %s534_s17 }
  0x6b   : > { %s773_s17 = smov %s775_s21  ;;  %23 = sbr.rel (!%p21_p10) target bundleno = 21 (0x15), region = 69 }
  0x70   :  { %267 = vsyncpa [#allocation5], 1 }
  0x71   :  { %269 = vsyncpa [#allocation5 + $0x1], 1 }
  0x72   :  { %270 = vsyncpa [#allocation6], 1 }
  0x73   :  { %272 = vsyncpa [#allocation6 + $0x1], 1 }

</bundles_post_ra>
